<compile_context>
chip_gen: v7x
topology: tpu7x:2x2x1
jax: 0.10.0
libtpu: 0.0.40
codegen_flags: <defaults>
</compile_context>

<pallas_src>
import jax
import jax.numpy as jnp
from jax.experimental import pallas as pl
from jax.experimental.pallas import tpu as pltpu


def _round_up(n, m):
    return ((n + m - 1) // m) * m


def mlp_kernel(x_ref, w0_ref, b0_ref, w1_ref, b1_ref, w2_ref, b2_ref, o_ref):
    # layer 0: features + ReLU (acts[1]); bf16 MXU inputs, f32 accumulate
    z0 = jnp.dot(x_ref[...], w0_ref[...],
                 preferred_element_type=jnp.float32) + b0_ref[...]
    a0 = jnp.maximum(z0, 0.0).astype(jnp.bfloat16)
    # layer 1: hidden1 + ReLU (acts[2])
    z1 = jnp.dot(a0, w1_ref[...],
                 preferred_element_type=jnp.float32) + b1_ref[...]
    a1 = jnp.maximum(z1, 0.0).astype(jnp.bfloat16)
    # layer 2: damage + Identity (acts[3]); output columns padded to 128 lanes
    z2 = jnp.dot(a1, w2_ref[...],
                 preferred_element_type=jnp.float32) + b2_ref[...]
    o_ref[...] = z2.astype(o_ref.dtype)


def net_forward(x, params, *, tile_b=512):
    """x: (B, D_in) f32. params: PyTorch-convention (out,in) weights + (out,) biases."""
    w0, b0 = params["features.weight"], params["features.bias"]
    w1, b1 = params["hidden1.weight"], params["hidden1.bias"]
    w2, b2 = params["damage.weight"], params["damage.bias"]

    B, d_in = x.shape
    h1, h2, d_out = w0.shape[0], w1.shape[0], w2.shape[0]

    # --- glue: transpose to (in, out), bf16 matmul operands, f32 biases -------
    w0t = w0.T.astype(jnp.bfloat16)
    w1t = w1.T.astype(jnp.bfloat16)
    # lane-dense output: pad last layer to a multiple of 128 output columns
    n_pad = _round_up(d_out, 128)
    w2t = jnp.zeros((h2, n_pad), jnp.bfloat16).at[:, :d_out].set(
        w2.T.astype(jnp.bfloat16))
    b0r = b0[None, :].astype(jnp.float32)
    b1r = b1[None, :].astype(jnp.float32)
    b2r = jnp.zeros((1, n_pad), jnp.float32).at[:, :d_out].set(
        b2[None, :].astype(jnp.float32))

    # --- batch tiling: TILE_B rows per grid step (multiple of 8 sublanes) -----
    tile_b = min(tile_b, _round_up(B, 8))
    b_pad = _round_up(B, tile_b)
    xb = x.astype(jnp.bfloat16)
    if b_pad != B:
        xb = jnp.pad(xb, ((0, b_pad - B), (0, 0)))

    grid = (b_pad // tile_b,)

    tiled = lambda shape: pl.BlockSpec(shape, lambda i: (i, 0))       # per-step tile
    resident = lambda shape: pl.BlockSpec(shape, lambda i: (0, 0))    # VMEM-resident

    flops = 2 * b_pad * (d_in * h1 + h1 * h2 + h2 * n_pad)
    bytes_accessed = (xb.size * 2
                      + (w0t.size + w1t.size + w2t.size) * 2
                      + (b0r.size + b1r.size + b2r.size) * 4
                      + b_pad * n_pad * 4)

    out = pl.pallas_call(
        mlp_kernel,
        out_shape=jax.ShapeDtypeStruct((b_pad, n_pad), jnp.float32),
        grid=grid,
        in_specs=[
            tiled((tile_b, d_in)),
            resident(w0t.shape), resident(b0r.shape),
            resident(w1t.shape), resident(b1r.shape),
            resident(w2t.shape), resident(b2r.shape),
        ],
        out_specs=tiled((tile_b, n_pad)),
        compiler_params=pltpu.CompilerParams(
            dimension_semantics=("parallel",)),
        cost_estimate=pl.CostEstimate(
            flops=flops, transcendentals=0, bytes_accessed=bytes_accessed),
    )(xb, w0t, b0r, w1t, b1r, w2t, b2r)

    # slice away the batch padding and the lane padding of the last layer
    return out[:B, :d_out]


def init_params(key, layersizes):
    """Deterministic init mimicking nn.Linear's U(-1/sqrt(fan_in), 1/sqrt(fan_in))."""
    names = ["features", "hidden1", "damage"]
    dims = [(layersizes[0], layersizes[1]),
            (layersizes[1], layersizes[2]),
            (layersizes[-2], layersizes[-1])]
    params = {}
    for name, (fan_in, fan_out) in zip(names, dims):
        key, kw, kb = jax.random.split(key, 3)
        bound = 1.0 / jnp.sqrt(fan_in)
        params[f"{name}.weight"] = jax.random.uniform(
            kw, (fan_out, fan_in), jnp.float32, -bound, bound)
        params[f"{name}.bias"] = jax.random.uniform(
            kb, (fan_out,), jnp.float32, -bound, bound)
    return params


def reference_forward(x, params):
    """Pure-JAX f32 reference of Net.forward for the correctness check."""
    a = jnp.maximum(x @ params["features.weight"].T + params["features.bias"], 0.0)
    a = jnp.maximum(a @ params["hidden1.weight"].T + params["hidden1.bias"], 0.0)
    return a @ params["damage.weight"].T + params["damage.bias"]


if __name__ == "__main__":
    layersizes = [16, 32, 32, 8]   # [in, hidden1, hidden2, out]
    batch = 128                    # small, but exercises a multi-step batch grid

    key = jax.random.PRNGKey(0)
    key, kx = jax.random.split(key)
    x = jax.random.normal(kx, (batch, layersizes[0]), jnp.float32)
    params = init_params(key, layersizes)

    # tile_b=64 -> 2 grid steps at this small batch (pipelined, parallel on v7x)
    out = net_forward(x, params, tile_b=64)
    out = jax.block_until_ready(out)

    ref = reference_forward(x, params)
    assert out.shape == (batch, layersizes[-1])
    # bf16 matmul inputs with f32 accumulation -> relaxed tolerance vs f32 ref
    assert jnp.allclose(out, ref, atol=5e-2, rtol=5e-2), \
        float(jnp.max(jnp.abs(out - ref)))

    print("KERNEL_OK")
</pallas_src>

<mosaic_0001>
module attributes {stable_mosaic.version = 11 : i64} {
  func.func @mlp_kernel(%arg0: i32, %arg1: memref<64x16xbf16, #tpu.memory_space<vmem>>, %arg2: memref<16x32xbf16, #tpu.memory_space<vmem>>, %arg3: memref<1x32xf32, #tpu.memory_space<vmem>>, %arg4: memref<32x32xbf16, #tpu.memory_space<vmem>>, %arg5: memref<1x32xf32, #tpu.memory_space<vmem>>, %arg6: memref<32x128xbf16, #tpu.memory_space<vmem>>, %arg7: memref<1x128xf32, #tpu.memory_space<vmem>>, %arg8: memref<64x128xf32, #tpu.memory_space<vmem>>) attributes {dimension_semantics = [#tpu.dimension_semantics<parallel>], iteration_bounds = array<i64: 2>, scalar_prefetch = 0 : i64, scratch_operands = 0 : i64, tpu.core_type = #tpu.core_type<tc>, window_params = [{transform_indices = @transform_0, window_bounds = array<i64: 64, 16>}, {pipeline_mode = #tpu.pipeline_mode<synchronous>, transform_indices = @transform_1, window_bounds = array<i64: 16, 32>}, {pipeline_mode = #tpu.pipeline_mode<synchronous>, transform_indices = @transform_2, window_bounds = array<i64: 1, 32>}, {pipeline_mode = #tpu.pipeline_mode<synchronous>, transform_indices = @transform_3, window_bounds = array<i64: 32, 32>}, {pipeline_mode = #tpu.pipeline_mode<synchronous>, transform_indices = @transform_4, window_bounds = array<i64: 1, 32>}, {pipeline_mode = #tpu.pipeline_mode<synchronous>, transform_indices = @transform_5, window_bounds = array<i64: 32, 128>}, {pipeline_mode = #tpu.pipeline_mode<synchronous>, transform_indices = @transform_6, window_bounds = array<i64: 1, 128>}, {transform_indices = @transform_7, window_bounds = array<i64: 64, 128>}]} {
    %c0 = arith.constant 0 : index
    %c0_0 = arith.constant 0 : index
    %0 = vector.load %arg1[%c0, %c0_0] : memref<64x16xbf16, #tpu.memory_space<vmem>>, vector<64x16xbf16>
    %c0_1 = arith.constant 0 : index
    %c0_2 = arith.constant 0 : index
    %1 = vector.load %arg2[%c0_1, %c0_2] : memref<16x32xbf16, #tpu.memory_space<vmem>>, vector<16x32xbf16>
    %cst = arith.constant dense<0.000000e+00> : vector<64x32xf32>
    %2 = tpu.matmul %0, %1, %cst {dimension_numbers = #tpu.dot_dimension_numbers<[1], [0], [0], [1], [0, 0, 1, 1], [], []>} : vector<64x16xbf16>, vector<16x32xbf16>, vector<64x32xf32> -> vector<64x32xf32>
    %c0_3 = arith.constant 0 : index
    %c0_4 = arith.constant 0 : index
    %3 = vector.load %arg3[%c0_3, %c0_4] : memref<1x32xf32, #tpu.memory_space<vmem>>, vector<1x32xf32>
    %4 = vector.broadcast %3 : vector<1x32xf32> to vector<64x32xf32>
    %5 = arith.addf %2, %4 : vector<64x32xf32>
    %cst_5 = arith.constant 0.000000e+00 : f32
    %6 = vector.broadcast %cst_5 : f32 to vector<64x32xf32>
    %7 = arith.maximumf %5, %6 : vector<64x32xf32>
    %8 = arith.truncf %7 : vector<64x32xf32> to vector<64x32xbf16>
    %c0_6 = arith.constant 0 : index
    %c0_7 = arith.constant 0 : index
    %9 = vector.load %arg4[%c0_6, %c0_7] : memref<32x32xbf16, #tpu.memory_space<vmem>>, vector<32x32xbf16>
    %cst_8 = arith.constant dense<0.000000e+00> : vector<64x32xf32>
    %10 = tpu.matmul %8, %9, %cst_8 {dimension_numbers = #tpu.dot_dimension_numbers<[1], [0], [0], [1], [0, 0, 1, 1], [], []>} : vector<64x32xbf16>, vector<32x32xbf16>, vector<64x32xf32> -> vector<64x32xf32>
    %c0_9 = arith.constant 0 : index
    %c0_10 = arith.constant 0 : index
    %11 = vector.load %arg5[%c0_9, %c0_10] : memref<1x32xf32, #tpu.memory_space<vmem>>, vector<1x32xf32>
    %12 = vector.broadcast %11 : vector<1x32xf32> to vector<64x32xf32>
    %13 = arith.addf %10, %12 : vector<64x32xf32>
    %cst_11 = arith.constant 0.000000e+00 : f32
    %14 = vector.broadcast %cst_11 : f32 to vector<64x32xf32>
    %15 = arith.maximumf %13, %14 : vector<64x32xf32>
    %16 = arith.truncf %15 : vector<64x32xf32> to vector<64x32xbf16>
    %c0_12 = arith.constant 0 : index
    %c0_13 = arith.constant 0 : index
    %17 = vector.load %arg6[%c0_12, %c0_13] : memref<32x128xbf16, #tpu.memory_space<vmem>>, vector<32x128xbf16>
    %cst_14 = arith.constant dense<0.000000e+00> : vector<64x128xf32>
    %18 = tpu.matmul %16, %17, %cst_14 {dimension_numbers = #tpu.dot_dimension_numbers<[1], [0], [0], [1], [0, 0, 1, 1], [], []>} : vector<64x32xbf16>, vector<32x128xbf16>, vector<64x128xf32> -> vector<64x128xf32>
    %c0_15 = arith.constant 0 : index
    %c0_16 = arith.constant 0 : index
    %19 = vector.load %arg7[%c0_15, %c0_16] : memref<1x128xf32, #tpu.memory_space<vmem>>, vector<1x128xf32>
    %20 = vector.broadcast %19 : vector<1x128xf32> to vector<64x128xf32>
    %21 = arith.addf %18, %20 : vector<64x128xf32>
    %c0_17 = arith.constant 0 : index
    %c0_18 = arith.constant 0 : index
    %22 = vector.load %arg8[%c0_17, %c0_18] : memref<64x128xf32, #tpu.memory_space<vmem>>, vector<64x128xf32>
    tpu.vector_store %arg8[%c0_17, %c0_18], %21 {strides = array<i32>} : memref<64x128xf32, #tpu.memory_space<vmem>>, vector<64x128xf32>,
    return
  }
  func.func @transform_0(%arg0: i32) -> (i32, i32) {
    %c0_i32 = arith.constant 0 : i32
    %c0_i32_0 = arith.constant 0 : i32
    return %arg0, %c0_i32 : i32, i32
  }
  func.func @transform_1(%arg0: i32) -> (i32, i32) {
    %c0_i32 = arith.constant 0 : i32
    %c0_i32_0 = arith.constant 0 : i32
    %c0_i32_1 = arith.constant 0 : i32
    return %c0_i32, %c0_i32_0 : i32, i32
  }
  func.func @transform_2(%arg0: i32) -> (i32, i32) {
    %c0_i32 = arith.constant 0 : i32
    %c0_i32_0 = arith.constant 0 : i32
    %c0_i32_1 = arith.constant 0 : i32
    return %c0_i32, %c0_i32_0 : i32, i32
  }
  func.func @transform_3(%arg0: i32) -> (i32, i32) {
    %c0_i32 = arith.constant 0 : i32
    %c0_i32_0 = arith.constant 0 : i32
    %c0_i32_1 = arith.constant 0 : i32
    return %c0_i32, %c0_i32_0 : i32, i32
  }
  func.func @transform_4(%arg0: i32) -> (i32, i32) {
    %c0_i32 = arith.constant 0 : i32
    %c0_i32_0 = arith.constant 0 : i32
    %c0_i32_1 = arith.constant 0 : i32
    return %c0_i32, %c0_i32_0 : i32, i32
  }
  func.func @transform_5(%arg0: i32) -> (i32, i32) {
    %c0_i32 = arith.constant 0 : i32
    %c0_i32_0 = arith.constant 0 : i32
    %c0_i32_1 = arith.constant 0 : i32
    return %c0_i32, %c0_i32_0 : i32, i32
  }
  func.func @transform_6(%arg0: i32) -> (i32, i32) {
    %c0_i32 = arith.constant 0 : i32
    %c0_i32_0 = arith.constant 0 : i32
    %c0_i32_1 = arith.constant 0 : i32
    return %c0_i32, %c0_i32_0 : i32, i32
  }
  func.func @transform_7(%arg0: i32) -> (i32, i32) {
    %c0_i32 = arith.constant 0 : i32
    %c0_i32_0 = arith.constant 0 : i32
    return %arg0, %c0_i32 : i32, i32
  }
}

</mosaic_0001>

<bundles_post_ra>
// kernel: tpu_custom_call.1
= control target key start
LH: loop header
LB: loop body
LE: loop exit
PB: predicated region body
PF: predicated region fallthrough
CT: control target
= control target key end

     0   :  { %12 = vsyncpa [#allocation3], 0  ;;  %s1096_s0 = inlined_call_operand.vmem [shape: bf16[128,16], index: 0, kind: input, shape index: {}]   ;;  %s1097_s1 = inlined_call_operand.vmem [shape: bf16[16,32], index: 1, kind: input, shape index: {}]   ;;  %s1098_s2 = inlined_call_operand.vmem [shape: f32[1,32], index: 2, kind: input, shape index: {}]   ;;  %s1099_s3 = inlined_call_operand.vmem [shape: bf16[32,32], index: 3, kind: input, shape index: {}]   ;;  %s1100_s4 = inlined_call_operand.vmem [shape: f32[1,32], index: 4, kind: input, shape index: {}]   ;;  %s1101_s5 = inlined_call_operand.vmem [shape: bf16[32,128], index: 5, kind: input, shape index: {}]   ;;  %s1102_s6 = inlined_call_operand.vmem [shape: f32[1,128], index: 6, kind: input, shape index: {}]   ;;  %s1103_s7 = inlined_call_operand.hbm [shape: f32[128,128], index: 7, kind: output, shape index: {}]  }
   0x1   :  { %14 = vsyncpa [#allocation3 + $0x1], 0  ;;  %s958_s24 = smov 0   ;;  %s960_s25 = smov 0  }
   0x2   :  { %s962_s26 = smov 0   ;;  %s964_s27 = smov 0  }
   0x3 LB: > { %s979_s28 = sadd.s32 4294967295, %s913_s27   ;;  %s711_s29 = sadd.s32 4294967294, %s913_s27   ;;  %s913_s27 = sphi %s964_s27, %s1109_s27   ;;  %s909_s26 = sphi %s962_s26, %s1108_s26   ;;  %s905_s25 = sphi %s960_s25, %s1107_s25   ;;  %s901_s24 = sphi %s958_s24, %s1106_s24  }
   0x4   : > { %s983_s30 = sadd.s32 1, %s913_s27   ;;  %s179_s8 = sadd.s32 1, %s909_s26 }
   0x5   : > { %s176_s9 = ssub.s32 %s913_s27, %s983_s30  ;;  %p189_p0 = scmp.ne.s32.totalorder %s909_s26, %s905_s25 }
   0x6   : > { %p177_p1 = scmp.eq.s32.totalorder %s176_s9, 0  ;;  %p190_p2 = scmp.eq.s32.totalorder %s979_s28, 1 }
   0x7   : > { %p195_p3 = scmp.ne.s32.totalorder %s905_s25, %s901_s24  ;;  %p196_p4 = scmp.eq.s32.totalorder %s711_s29, 1 }
   0x8   : > { %s994_s10 = scalar_select %p177_p1, %s909_s26, %s179_s8  }
   0x9   : > { %p996_p5 = por %p190_p2, %p189_p0  ;;  %p1000_p6 = por %p196_p4, %p195_p3 }
   0xa   : > { %p714_p7 = scmp.ge.s32.totalorder %s913_s27, 1  ;;  %p241_p8 = scmp.lt.s32.totalorder %s913_s27, 3 }
   0xc   : > { %p242_p9 = pnand %p714_p7, %p241_p8 }
   0xd   : > { %v842_v0 = vld [vmem:[%s1097_s1] sm:$0xff] (!%p242_p9)   ;;  %s716_s15 = sshll.u32 (!%p242_p9), %s979_s28, 3  ;;  %vm324_vm0 = vcmask (!%p242_p9), 130048   ;;  %v848_v6 = vld [vmem:[%s1099_s3 + $0x8] sm:$0xff] (!%p242_p9)   ;;  %vm437_vm1 = vcmask (!%p242_p9), 261120   ;;  %s270_s18 = sand.u32 (!%p242_p9), 1, %s905_s25  }
   0xe   : > { %245 = sbr.rel (%p242_p9) target bundleno = 710 (0x2c6), region = 48  ;;  %p274_p10 = scmp.lt.s32.totalorder (!%p242_p9), %s716_s15, 15  ;;  %765 = vmatprep.subr.bf16.mxu0 (!%p242_p9), %v842_v0  ;;  %799 = vmatprep.subr.bf16.mxu1 (!%p242_p9), %v842_v0  ;;  %v847_v5 = vld [vmem:[%s1099_s3] sm:$0xff] (!%p242_p9)   ;;  %v850_v37 = vld [vmem:[%s1101_s5 + $0x8] sm:$0xff] (!%p242_p9)  }
   0xf   : > { %766 = vmatpush3.bf16.msra.mxu0 (!%p242_p9), %v842_v0  ;;  %800 = vmatpush3.bf16.msra.mxu1 (!%p242_p9), %v842_v0  ;;  %v718_v7 = vld [vmem:[%s1098_s2] ss:$0 sm:$0xff] (!%p242_p9)  ;;  %s747_s23 = sshll.u32 (!%p242_p9), %s979_s28, 10  ;;  %s1055_s28 = scalar_lea.sflag (!%p242_p9), [#allocation3], %s270_s18 }
  0x10   : > { %775 = vmatprep.subr.bf16.mxu1 (!%p242_p9), %v847_v5  ;;  %v849_v36 = vld [vmem:[%s1101_s5] sm:$0xff] (!%p242_p9)   ;;  %s1049_s13 = scalar_lea.hbm (!%p242_p9), %s1103_s7, %s747_s23 }
  0x11   : > { %787 = vmatprep.subr.bf16.mxu0 (!%p242_p9), %v849_v36  ;;  %v728_v38 = vld [vmem:[%s1100_s4] ss:$0 sm:$0xff] (!%p242_p9) }
  0x15   : > { %s1111_s15 = smov (!%p274_p10, %s716_s15), 15 }
  0x16   : > { %s717_s16 = sshll.u32 %s1111_s15, 2  ;;  %s915_s15 = smov [#allocation2]  }
  0x17   : > { %s277_s19 = scalar_lea.vmem %s1096_s0, %s717_s16  ;;  %s855_s16 = sshll.u32 %s915_s15, 4  ;;  %s856_s16 = int_to_ptr.vmem [resolvable:$false] %s855_s16 }
  0x18   : > { %v843_v1 = vld [vmem:[%s277_s19] sm:$0xff]   ;;  %v844_v2 = vld [vmem:[%s277_s19 + $0x8] sm:$0xff]   ;;  %v845_v3 = vld [vmem:[%s277_s19 + $0x10] sm:$0xff]   ;;  %s857_s17 = scalar_lea.vmem %s856_s16, 2048 }
  0x19   : > { %767 = vmatprep.mubr.msk.bf16.mxu0 %vm324_vm0, %v843_v1  ;;  %v846_v4 = vld [vmem:[%s277_s19 + $0x18] sm:$0xff]   ;;  %771 = vmatprep.mubr.msk.bf16.mxu1 %vm324_vm0, %v845_v3  ;;  %s715_s19 = sshll.u32 %s270_s18, 6  ;;  %v735_v3 = vld [vmem:[%s1102_s6] ss:$0 sm:$0xff] }
  0x1a   : > { %768 = vmatmul.mubr.msk.bf16.vlgmr.msra.gmra.mrb[0].mxu0 %vm324_vm0, %v844_v2  ;;  %772 = vmatmul.mubr.msk.bf16.vlgmr.msra.gmra.mrb[0].mxu1 %vm324_vm0, %v846_v4  ;;  %s272_s22 = scalar_lea.vmem [#allocation2], %s715_s19 }
  0x1b   : > { %776 = vmatpush3.bf16.msra.mxu1 %v847_v5  ;;  %788 = vmatpush3.bf16.msra.mxu0 %v849_v36  ;;  %s649_s29 = sshll.u32 %s272_s22, 4  ;;  %s1051_s29 = int_to_ptr.vmem [resolvable:$true] %s649_s29 }
  0x1c   : > { %777 = vmatprep.subr.bf16.mxu1 %v848_v6  ;;  %789 = vmatprep.subr.bf16.mxu0 %v850_v37  ;;  %s851_s14 = scalar_lea.vmem %s1051_s29, 1024  ;;  %p858_p0 = scmp.lt.s32.totalorder %s1051_s29, %s856_s16 }
  0x1d   : > { %p852_p11 = scmp.ne.s32.totalorder %s1051_s29, %s851_s14  ;;  %p859_p1 = scmp.lt.s32.totalorder %s857_s17, %s851_s14 }
  0x1f   : > { %778 = vmatpush3.bf16.msra.mxu1 %v848_v6  ;;  %790 = vmatpush3.bf16.msra.mxu0 %v850_v37  ;;  %p853_p12 = pnand %p852_p11, %p996_p5  ;;  %p860_p2 = por %p859_p1, %p858_p0 }
  0x21   : > { %p854_p13 = pneg %p853_p12 }
  0x23   : > { %p861_p3 = pnand %p860_p2, %p854_p13 }
  0xed   : > { %v769_v8 = vpop.f32.mrb[0].mxu0  ;;  %v773_v13 = vpop.f32.mrb[0].mxu1 }
  0xee   : > { %v380_v9 = vadd.f32 %v769_v8, %v718_v7  ;;  %v371_v10 = vpop.f32.mrb[1].mxu0  ;;  %v396_v16 = vadd.f32 %v773_v13, %v718_v7  ;;  %v387_v17 = vpop.f32.mrb[1].mxu1 }
  0xef   : > { %v372_v11 = vadd.f32 %v718_v7, %v371_v10  ;;  %v770_v12 = vpop.f32.mrb[2].mxu0  ;;  %v388_v19 = vadd.f32 %v718_v7, %v387_v17  ;;  %v774_v20 = vpop.f32.mrb[2].mxu1 }
  0xf0   : > { %v383_v14 = vadd.f32 %v770_v12, %v718_v7  ;;  %v374_v15 = vpop.f32.mrb[3].mxu0  ;;  %v404_v21 = vmax.f32 %v380_v9, 0.0  ;;  %v408_v23 = vmax.f32 %v396_v16, 0.0  ;;  %v399_v24 = vadd.f32 %v774_v20, %v718_v7  ;;  %v390_v25 = vpop.f32.mrb[3].mxu1 }
  0xf1   : > { %v375_v18 = vadd.f32 %v718_v7, %v374_v15  ;;  %v402_v26 = vmax.f32 %v372_v11, 0.0  ;;  %v406_v28 = vmax.f32 %v388_v19, 0.0  ;;  %v391_v29 = vadd.f32 %v718_v7, %v390_v25 }
  0xf2   : > { %v405_v22 = vmax.f32 %v383_v14, 0.0  ;;  %v409_v31 = vmax.f32 %v399_v24, 0.0 }
  0xf3   : > { %v403_v27 = vmax.f32 %v375_v18, 0.0  ;;  %v407_v33 = vmax.f32 %v391_v29, 0.0 }
  0xf4   : > { %v411_v30 = vpack.c.bf16 %v405_v22, %v404_v21  ;;  %v413_v34 = vpack.c.bf16 %v409_v31, %v408_v23 }
  0xf5   : > { %v410_v32 = vpack.c.bf16 %v403_v27, %v402_v26  ;;  %v412_v35 = vpack.c.bf16 %v407_v33, %v406_v28 }
  0xf7   : > { %779 = vmatprep.mubr.msk.bf16.mxu1 %vm437_vm1, %v410_v32 }
  0xf8   : > { %780 = vmatmul.mubr.msk.bf16.vlgmr.msra.gmra.mrb[4].mxu1 %vm437_vm1, %v411_v30 }
  0xf9   : > { %783 = vmatprep.mubr.msk.bf16.mxu1 %vm437_vm1, %v412_v35 }
 0x100   : > { %784 = vmatmul.mubr.msk.bf16.gmra.mrb[8].mxu1 %vm437_vm1, %v413_v34 }
 0x1cb   : > { %v781_v39 = vpop.f32.mrb[4].mxu1 }
 0x1cc   : > { %v493_v40 = vadd.f32 %v781_v39, %v728_v38  ;;  %v484_v41 = vpop.f32.mrb[5].mxu1 }
 0x1cd   : > { %v485_v42 = vadd.f32 %v728_v38, %v484_v41  ;;  %v782_v43 = vpop.f32.mrb[6].mxu1 }
 0x1ce   : > { %v496_v44 = vadd.f32 %v782_v43, %v728_v38  ;;  %v487_v45 = vpop.f32.mrb[7].mxu1  ;;  %v517_v47 = vmax.f32 %v493_v40, 0.0 }
 0x1cf   : > { %v488_v46 = vadd.f32 %v728_v38, %v487_v45  ;;  %v515_v49 = vmax.f32 %v485_v42, 0.0 }
 0x1d0   : > { %v518_v48 = vmax.f32 %v496_v44, 0.0 }
 0x1d1   : > { %v516_v50 = vmax.f32 %v488_v46, 0.0 }
 0x1d2   : > { %v524_v51 = vpack.c.bf16 %v518_v48, %v517_v47 }
 0x1d3   : > { %v523_v52 = vpack.c.bf16 %v516_v50, %v515_v49  ;;  %v785_v53 = vpop.f32.mrb[8].mxu1 }
 0x1d4   : > { %v509_v54 = vadd.f32 %v785_v53, %v728_v38  ;;  %v500_v55 = vpop.f32.mrb[9].mxu1 }
 0x1d5   : > { %v501_v56 = vadd.f32 %v728_v38, %v500_v55  ;;  %v786_v57 = vpop.f32.mrb[10].mxu1  ;;  %791 = vmatprep.mubr.msk.bf16.mxu0 %vm437_vm1, %v523_v52 }
 0x1d6   : > { %v512_v58 = vadd.f32 %v786_v57, %v728_v38  ;;  %v503_v59 = vpop.f32.mrb[11].mxu1  ;;  %792 = vmatmul.mubr.msk.bf16.vlgmr.msra.gmra.mrb[4].mxu0 %vm437_vm1, %v524_v51  ;;  %v521_v61 = vmax.f32 %v509_v54, 0.0 }
 0x1d7   : > { %v504_v60 = vadd.f32 %v728_v38, %v503_v59  ;;  %v519_v63 = vmax.f32 %v501_v56, 0.0 }
 0x1d8   : > { %v522_v62 = vmax.f32 %v512_v58, 0.0 }
 0x1d9   : > { %v520_v0 = vmax.f32 %v504_v60, 0.0 }
 0x1da   : > { %v526_v1 = vpack.c.bf16 %v522_v62, %v521_v61 }
 0x1db   : > { %v525_v2 = vpack.c.bf16 %v520_v0, %v519_v63 }
 0x1dd   : > { %795 = vmatprep.mubr.msk.bf16.mxu0 %vm437_vm1, %v525_v2 }
 0x1de   : > { %796 = vmatmul.mubr.msk.bf16.gmra.mrb[8].mxu0 %vm437_vm1, %v526_v1 }
 0x2a9   : > { %v793_v4 = vpop.f32.mrb[4].mxu0 }
 0x2aa   : > { %v605_v5 = vadd.f32 %v793_v4, %v735_v3  ;;  %v596_v6 = vpop.f32.mrb[5].mxu0 }
 0x2ab   : > { %v597_v7 = vadd.f32 %v735_v3, %v596_v6  ;;  %v794_v8 = vpop.f32.mrb[6].mxu0 }
 0x2ac   : > { %629 = vst [vmem:[%s272_s22 + $0x10] sm:$0xff] %v605_v5  ;;  %v608_v9 = vadd.f32 %v794_v8, %v735_v3  ;;  %v599_v10 = vpop.f32.mrb[7].mxu0 }
 0x2ad   : > { %627 = vst [vmem:[%s272_s22] sm:$0xff] %v597_v7  ;;  %v600_v11 = vadd.f32 %v735_v3, %v599_v10 }
 0x2ae   : > { %630 = vst [vmem:[%s272_s22 + $0x18] sm:$0xff] %v608_v9 }
 0x2af   : > { %628 = vst [vmem:[%s272_s22 + $0x8] sm:$0xff] %v600_v11 }
 0x2b1   : > { %v797_v12 = vpop.f32.mrb[8].mxu0 }
 0x2b2   : > { %v621_v13 = vadd.f32 %v797_v12, %v735_v3  ;;  %v612_v14 = vpop.f32.mrb[9].mxu0 }
 0x2b3   : > { %v613_v15 = vadd.f32 %v735_v3, %v612_v14  ;;  %v798_v16 = vpop.f32.mrb[10].mxu0 }
 0x2b4   : > { %633 = vst [vmem:[%s272_s22 + $0x30] sm:$0xff] %v621_v13  ;;  %v624_v17 = vadd.f32 %v798_v16, %v735_v3  ;;  %v615_v18 = vpop.f32.mrb[11].mxu0 }
 0x2b5   : > { %631 = vst [vmem:[%s272_s22 + $0x20] sm:$0xff] %v613_v15  ;;  %v616_v19 = vadd.f32 %v735_v3, %v615_v18 }
 0x2b6   : > { %634 = vst [vmem:[%s272_s22 + $0x38] sm:$0xff] %v624_v17 }
 0x2b7   : > { %632 = vst [vmem:[%s272_s22 + $0x28] sm:$0xff] %v616_v19 }
 0x2b8   : > { %864 = shalt.err (!%p861_p3)
}
 0x2b9   : > { %s865_s18 = scalar_lea.hbm %s1049_s13, 1024  ;;  %s869_s21 = scalar_lea.hbm %s1103_s7, 2048 }
 0x2ba   : > { %p866_p4 = scmp.ne.s32.totalorder %s1049_s13, %s865_s18  ;;  %p870_p9 = scmp.lt.u32.totalorder %s1049_s13, %s1103_s7 }
 0x2bb   : > { %p871_p10 = scmp.lt.u32.totalorder %s869_s21, %s865_s18  ;;  %p873_p12 = scmp.lt.u32.totalorder %s865_s18, %s1049_s13 }
 0x2bc   : > { %p867_p7 = pnand %p866_p4, %p996_p5 }
 0x2bd   : > { %p872_p11 = por %p871_p10, %p870_p9 }
 0x2be   : > { %p868_p8 = pneg %p867_p7 }
 0x2bf   : > { %p874_p13 = por %p873_p12, %p872_p11 }
 0x2c1   : > { %p875_p0 = pnand %p874_p13, %p868_p8 }
 0x2c3   : > { %878 = shalt.err (!%p875_p0)
}
 0x2c4   : > { %s916_s8 = smov 128   ;;  %s917_s9 = smov 8  }
 0x2c5   : > { %801 = dma.vmem_to_hbm [thread:$0]  (%p996_p5), %s1051_s29, 1024, %s1049_s13, %s1055_s28, %s916_s8, %s916_s8, %s917_s9  }
 0x2c6 PF: > { %p807_p1 = scmp.ge.s32.totalorder %s913_s27, 2  ;;  %s664_s14 = sand.u32 1, %s901_s24  }
 0x2c7   : > { %s665_s15 = scalar_lea.sflag [#allocation3], %s664_s14 }
 0x2c8   : > { %p804_p2 = pnand %p807_p1, %p1000_p6 }
 0x2ca   : > { %896 = dma.done.wait (!%p804_p2), %s665_s15, 1024  }
 0x2cb   : > { %898 = vsyncadd (!%p804_p2), %s665_s15, 4294966272  ;;  %p17_p3 = scmp.ge.s32.totalorder %s983_s30, 4   ;;  %s1106_s24 = smov %s905_s25 }
 0x2cc   : > { %s1107_s25 = smov %s909_s26  ;;  %s1108_s26 = smov %s994_s10 }
 0x2cd   : > { %s1109_s27 = smov %s983_s30  ;;  %19 = sbr.rel (!%p17_p3) target bundleno = 3 (0x3), region = 83 }
 0x2d4   :  { %670 = vsyncpa [#allocation3], 1 }
 0x2d5   :  { %672 = vsyncpa [#allocation3 + $0x1], 1 }

</bundles_post_ra>
